<compile_context>
chip_gen: v6e
topology: v6e:2x2x1
jax: 0.10.0
libtpu: 0.0.40
codegen_flags: <defaults>
</compile_context>

<pallas_src>
import functools

import jax
import jax.numpy as jnp
from jax.experimental import pallas as pl
from jax.experimental.pallas import tpu as pltpu

MARGIN = 0.3
BIG = 1e30  # finite stand-in for +/- inf in the masked reductions


def _pick_vmem_limit():
    """Generation-gated scoped-VMEM limit (raise on v5e/v6e, cap on v7x)."""
    try:
        cap = pltpu.get_tpu_info().vmem_capacity_bytes
    except Exception:
        return 48 * 1024 * 1024  # safe everywhere
    if cap >= 100 * 1024 * 1024:     # v5e / v6e: 128 MiB physical
        return 96 * 1024 * 1024
    return 48 * 1024 * 1024          # v7x: 64 MiB physical


def _triplet_kernel(xrow_ref, xall_ref, sqc_ref, sqr_ref, tcol_ref, trow_ref,
                    hinge_ref, *, tm, n_valid, margin):
    i = pl.program_id(0)

    # Gram block on the MXU: contract dim 1 of both operands (== x_tile @ x.T
    # without materializing any transpose).  bf16 inputs, f32 accumulation.
    gram = jax.lax.dot_general(
        xrow_ref[...], xall_ref[...],
        dimension_numbers=(((1,), (1,)), ((), ())),
        preferred_element_type=jnp.float32)                  # (TM, Np) f32

    # Squared pairwise distances.  Padded columns of sq_row were pre-set to
    # BIG on the wrapper side, so they can never be mined as negatives.
    dist2 = sqc_ref[...] + sqr_ref[...] - 2.0 * gram          # (TM, Np)

    # Force the diagonal to its true value (0) so bf16 Gram round-off cannot
    # inflate d(i,i).
    n_cols = dist2.shape[1]
    row_ids = i * tm + jax.lax.broadcasted_iota(jnp.int32, (tm, 1), 0)
    col_ids = jax.lax.broadcasted_iota(jnp.int32, (1, n_cols), 1)
    dist2 = jnp.where(row_ids == col_ids, 0.0, dist2)

    # Hard mining on squared distances (monotone => equivalent).  Padded
    # labels are an int32-min sentinel, so they never match a real row's
    # label (no col_valid mask needed for the positives either).
    same = tcol_ref[...] == trow_ref[...]                     # (TM, Np)
    ap2 = jnp.max(jnp.where(same, dist2, -BIG), axis=1, keepdims=True)
    an2 = jnp.min(jnp.where(same, BIG, dist2), axis=1, keepdims=True)

    # Only 2*TM sqrt ops (EUP) instead of N^2.
    dist_ap = jnp.sqrt(jnp.maximum(ap2, 1e-12))
    dist_an = jnp.sqrt(jnp.maximum(an2, 1e-12))

    # MarginRankingLoss(margin)(dist_an, dist_ap, y=1) per row; padded rows
    # are zeroed here and the mean over the true N is taken in the wrapper.
    hinge = jnp.maximum(dist_ap - dist_an + margin, 0.0)
    hinge_ref[...] = jnp.where(row_ids < n_valid, hinge, 0.0)


def triplet_loss(inputs, targets, margin=MARGIN, gram_dtype=jnp.bfloat16):
    """inputs: (N, D) float features; targets: (N,) integer labels.

    gram_dtype=jnp.float32 gives exact-parity mining at ~3-6x MXU cost.
    """
    n, d = inputs.shape
    n_pad = max(128, ((n + 127) // 128) * 128)   # lane-dense column axis
    d_pad = max(128, ((d + 127) // 128) * 128)   # MXU-native contracting dim
    tm = 256 if (n_pad % 256 == 0) else 128      # row tile

    x = inputs.astype(jnp.float32)
    sq = jnp.sum(x * x, axis=1)                               # (N,) f32

    # Wrapper-side padding / casts (fuse into producers for free).
    x = jnp.pad(x, ((0, n_pad - n), (0, d_pad - d)))
    xb = x.astype(gram_dtype)                                 # (Np, Dp)
    sq_col = jnp.pad(sq, (0, n_pad - n)).reshape(n_pad, 1)
    sq_row = jnp.pad(sq, (0, n_pad - n),
                     constant_values=BIG).reshape(1, n_pad)   # BIG => padded
                                                              # cols never mined
    pad_label = jnp.iinfo(jnp.int32).min  # must never be a real label
    t = jnp.pad(targets.astype(jnp.int32), (0, n_pad - n),
                constant_values=pad_label)
    t_col = t.reshape(n_pad, 1)
    t_row = t.reshape(1, n_pad)

    kernel = functools.partial(
        _triplet_kernel, tm=tm, n_valid=n, margin=float(margin))

    hinge = pl.pallas_call(
        kernel,
        out_shape=jax.ShapeDtypeStruct((n_pad, 1), jnp.float32),
        grid=(n_pad // tm,),
        in_specs=[
            pl.BlockSpec((tm, d_pad), lambda i: (i, 0)),      # row tile of x
            pl.BlockSpec((n_pad, d_pad), lambda i: (0, 0)),   # full x (resident)
            pl.BlockSpec((tm, 1), lambda i: (i, 0)),          # sq_col tile
            pl.BlockSpec((1, n_pad), lambda i: (0, 0)),       # sq_row (resident)
            pl.BlockSpec((tm, 1), lambda i: (i, 0)),          # labels (col) tile
            pl.BlockSpec((1, n_pad), lambda i: (0, 0)),       # labels (row)
        ],
        out_specs=pl.BlockSpec((tm, 1), lambda i: (i, 0)),    # per-row hinge
        compiler_params=pltpu.CompilerParams(
            dimension_semantics=("parallel",),                # v7x: 2 TCs split rows
            vmem_limit_bytes=_pick_vmem_limit(),
        ),
    )(xb, xb, sq_col, sq_row, t_col, t_row)

    # Mean over the true batch size (padded rows already zeroed in-kernel).
    return jnp.sum(hinge) / n


def _triplet_loss_ref(inputs, targets, margin=MARGIN):
    """Pure-JAX reference matching the PyTorch forward."""
    x = inputs.astype(jnp.float32)
    sq = jnp.sum(x * x, axis=1, keepdims=True)
    dist = jnp.sqrt(jnp.maximum(sq + sq.T - 2.0 * (x @ x.T), 1e-12))
    mask = targets[:, None] == targets[None, :]
    dist_ap = jnp.max(jnp.where(mask, dist, -jnp.inf), axis=1)
    dist_an = jnp.min(jnp.where(mask, jnp.inf, dist), axis=1)
    return jnp.mean(jnp.maximum(dist_ap - dist_an + margin, 0.0))


if __name__ == "__main__":
    key = jax.random.PRNGKey(0)
    n, d = 8, 32  # 4 identities x 2 samples, 32-dim embeddings
    feats = jax.random.normal(key, (n, d), dtype=jnp.float32)
    labels = jnp.array([0, 0, 1, 1, 2, 2, 3, 3], dtype=jnp.int32)

    loss = triplet_loss(feats, labels)
    jax.block_until_ready(loss)

    ref = _triplet_loss_ref(feats, labels)
    # Generous tolerance: bf16 Gram inputs perturb distances by ~1e-2 at most.
    assert abs(float(loss) - float(ref)) < 5e-2, (float(loss), float(ref))
    print("KERNEL_OK")
</pallas_src>

<mosaic_0001>
module attributes {stable_mosaic.version = 11 : i64} {
  func.func @_triplet_kernel(%arg0: i32, %arg1: memref<128x128xbf16, #tpu.memory_space<vmem>>, %arg2: memref<128x128xbf16, #tpu.memory_space<vmem>>, %arg3: memref<128x1xf32, #tpu.memory_space<vmem>>, %arg4: memref<1x128xf32, #tpu.memory_space<vmem>>, %arg5: memref<128x1xi32, #tpu.memory_space<vmem>>, %arg6: memref<1x128xi32, #tpu.memory_space<vmem>>, %arg7: memref<128x1xf32, #tpu.memory_space<vmem>>) attributes {dimension_semantics = [#tpu.dimension_semantics<parallel>], iteration_bounds = array<i64: 1>, scalar_prefetch = 0 : i64, scratch_operands = 0 : i64, tpu.core_type = #tpu.core_type<tc>, window_params = [{transform_indices = @transform_0, window_bounds = array<i64: 128, 128>}, {pipeline_mode = #tpu.pipeline_mode<synchronous>, transform_indices = @transform_1, window_bounds = array<i64: 128, 128>}, {transform_indices = @transform_2, window_bounds = array<i64: 128, 1>}, {pipeline_mode = #tpu.pipeline_mode<synchronous>, transform_indices = @transform_3, window_bounds = array<i64: 1, 128>}, {transform_indices = @transform_4, window_bounds = array<i64: 128, 1>}, {pipeline_mode = #tpu.pipeline_mode<synchronous>, transform_indices = @transform_5, window_bounds = array<i64: 1, 128>}, {transform_indices = @transform_6, window_bounds = array<i64: 128, 1>}]} {
    %c0 = arith.constant 0 : index
    %c0_0 = arith.constant 0 : index
    %0 = vector.load %arg1[%c0, %c0_0] : memref<128x128xbf16, #tpu.memory_space<vmem>>, vector<128x128xbf16>
    %c0_1 = arith.constant 0 : index
    %c0_2 = arith.constant 0 : index
    %1 = vector.load %arg2[%c0_1, %c0_2] : memref<128x128xbf16, #tpu.memory_space<vmem>>, vector<128x128xbf16>
    %cst = arith.constant dense<0.000000e+00> : vector<128x128xf32>
    %2 = tpu.matmul %0, %1, %cst {dimension_numbers = #tpu.dot_dimension_numbers<[1], [1], [0], [0], [0, 0, 1, 0], [], []>} : vector<128x128xbf16>, vector<128x128xbf16>, vector<128x128xf32> -> vector<128x128xf32>
    %c0_3 = arith.constant 0 : index
    %c0_4 = arith.constant 0 : index
    %3 = vector.load %arg3[%c0_3, %c0_4] : memref<128x1xf32, #tpu.memory_space<vmem>>, vector<128x1xf32>
    %c0_5 = arith.constant 0 : index
    %c0_6 = arith.constant 0 : index
    %4 = vector.load %arg4[%c0_5, %c0_6] : memref<1x128xf32, #tpu.memory_space<vmem>>, vector<1x128xf32>
    %5 = vector.broadcast %3 : vector<128x1xf32> to vector<128x128xf32>
    %6 = vector.broadcast %4 : vector<1x128xf32> to vector<128x128xf32>
    %7 = arith.addf %5, %6 : vector<128x128xf32>
    %cst_7 = arith.constant 2.000000e+00 : f32
    %8 = vector.broadcast %cst_7 : f32 to vector<128x128xf32>
    %9 = arith.mulf %8, %2 : vector<128x128xf32>
    %10 = arith.subf %7, %9 : vector<128x128xf32>
    %c128_i32 = arith.constant 128 : i32
    %11 = arith.muli %arg0, %c128_i32 : i32
    %12 = tpu.iota {dimensions = array<i32: 0>} : vector<128x1xi32>
    %13 = vector.broadcast %11 : i32 to vector<128x1xi32>
    %14 = arith.addi %13, %12 : vector<128x1xi32>
    %15 = tpu.iota {dimensions = array<i32: 1>} : vector<1x128xi32>
    %16 = vector.broadcast %14 : vector<128x1xi32> to vector<128x128xi32>
    %17 = vector.broadcast %15 : vector<1x128xi32> to vector<128x128xi32>
    %18 = arith.cmpi eq, %16, %17 : vector<128x128xi32>
    %cst_8 = arith.constant 0.000000e+00 : f32
    %19 = vector.broadcast %cst_8 : f32 to vector<128x128xf32>
    %20 = arith.select %18, %19, %10 : vector<128x128xi1>, vector<128x128xf32>
    %c0_9 = arith.constant 0 : index
    %c0_10 = arith.constant 0 : index
    %21 = vector.load %arg5[%c0_9, %c0_10] : memref<128x1xi32, #tpu.memory_space<vmem>>, vector<128x1xi32>
    %c0_11 = arith.constant 0 : index
    %c0_12 = arith.constant 0 : index
    %22 = vector.load %arg6[%c0_11, %c0_12] : memref<1x128xi32, #tpu.memory_space<vmem>>, vector<1x128xi32>
    %23 = vector.broadcast %21 : vector<128x1xi32> to vector<128x128xi32>
    %24 = vector.broadcast %22 : vector<1x128xi32> to vector<128x128xi32>
    %25 = arith.cmpi eq, %23, %24 : vector<128x128xi32>
    %cst_13 = arith.constant -1.000000e+30 : f32
    %26 = vector.broadcast %cst_13 : f32 to vector<128x128xf32>
    %27 = arith.select %25, %20, %26 : vector<128x128xi1>, vector<128x128xf32>
    %cst_14 = arith.constant dense<0xFF800000> : vector<128xf32>
    %28 = vector.multi_reduction <maximumf>, %27, %cst_14 [1] : vector<128x128xf32> to vector<128xf32>
    %29 = vector.shape_cast %28 : vector<128xf32> to vector<128x1xf32>
    %cst_15 = arith.constant 1.000000e+30 : f32
    %30 = vector.broadcast %cst_15 : f32 to vector<128x128xf32>
    %31 = arith.select %25, %30, %20 : vector<128x128xi1>, vector<128x128xf32>
    %cst_16 = arith.constant dense<0x7F800000> : vector<128xf32>
    %32 = vector.multi_reduction <minimumf>, %31, %cst_16 [1] : vector<128x128xf32> to vector<128xf32>
    %33 = vector.shape_cast %32 : vector<128xf32> to vector<128x1xf32>
    %cst_17 = arith.constant 9.99999996E-13 : f32
    %34 = vector.broadcast %cst_17 : f32 to vector<128x1xf32>
    %35 = arith.maximumf %29, %34 : vector<128x1xf32>
    %36 = math.sqrt %35 : vector<128x1xf32>
    %cst_18 = arith.constant 9.99999996E-13 : f32
    %37 = vector.broadcast %cst_18 : f32 to vector<128x1xf32>
    %38 = arith.maximumf %33, %37 : vector<128x1xf32>
    %39 = math.sqrt %38 : vector<128x1xf32>
    %40 = arith.subf %36, %39 : vector<128x1xf32>
    %cst_19 = arith.constant 3.000000e-01 : f32
    %41 = vector.broadcast %cst_19 : f32 to vector<128x1xf32>
    %42 = arith.addf %40, %41 : vector<128x1xf32>
    %cst_20 = arith.constant 0.000000e+00 : f32
    %43 = vector.broadcast %cst_20 : f32 to vector<128x1xf32>
    %44 = arith.maximumf %42, %43 : vector<128x1xf32>
    %c8_i32 = arith.constant 8 : i32
    %45 = vector.broadcast %c8_i32 : i32 to vector<128x1xi32>
    %46 = arith.cmpi slt, %14, %45 : vector<128x1xi32>
    %cst_21 = arith.constant 0.000000e+00 : f32
    %47 = vector.broadcast %cst_21 : f32 to vector<128x1xf32>
    %48 = arith.select %46, %44, %47 : vector<128x1xi1>, vector<128x1xf32>
    %c0_22 = arith.constant 0 : index
    %c0_23 = arith.constant 0 : index
    %49 = vector.load %arg7[%c0_22, %c0_23] : memref<128x1xf32, #tpu.memory_space<vmem>>, vector<128x1xf32>
    tpu.vector_store %arg7[%c0_22, %c0_23], %48 {strides = array<i32>} : memref<128x1xf32, #tpu.memory_space<vmem>>, vector<128x1xf32>,
    return
  }
  func.func @transform_0(%arg0: i32) -> (i32, i32) {
    %c0_i32 = arith.constant 0 : i32
    %c0_i32_0 = arith.constant 0 : i32
    return %arg0, %c0_i32 : i32, i32
  }
  func.func @transform_1(%arg0: i32) -> (i32, i32) {
    %c0_i32 = arith.constant 0 : i32
    %c0_i32_0 = arith.constant 0 : i32
    %c0_i32_1 = arith.constant 0 : i32
    return %c0_i32, %c0_i32_0 : i32, i32
  }
  func.func @transform_2(%arg0: i32) -> (i32, i32) {
    %c0_i32 = arith.constant 0 : i32
    %c0_i32_0 = arith.constant 0 : i32
    return %arg0, %c0_i32 : i32, i32
  }
  func.func @transform_3(%arg0: i32) -> (i32, i32) {
    %c0_i32 = arith.constant 0 : i32
    %c0_i32_0 = arith.constant 0 : i32
    %c0_i32_1 = arith.constant 0 : i32
    return %c0_i32, %c0_i32_0 : i32, i32
  }
  func.func @transform_4(%arg0: i32) -> (i32, i32) {
    %c0_i32 = arith.constant 0 : i32
    %c0_i32_0 = arith.constant 0 : i32
    return %arg0, %c0_i32 : i32, i32
  }
  func.func @transform_5(%arg0: i32) -> (i32, i32) {
    %c0_i32 = arith.constant 0 : i32
    %c0_i32_0 = arith.constant 0 : i32
    %c0_i32_1 = arith.constant 0 : i32
    return %c0_i32, %c0_i32_0 : i32, i32
  }
  func.func @transform_6(%arg0: i32) -> (i32, i32) {
    %c0_i32 = arith.constant 0 : i32
    %c0_i32_0 = arith.constant 0 : i32
    return %arg0, %c0_i32 : i32, i32
  }
}

</mosaic_0001>

<bundles_post_ra>
// kernel: tpu_custom_call.1
= control target key start
LH: loop header
LB: loop body
LE: loop exit
PB: predicated region body
PF: predicated region fallthrough
CT: control target
= control target key end

     0   :  { %v1112_v1 = vmov 0   ;;  %v401_v19 = vlaneseq  ;;  %vm986_vm2 = vcmask 7168   ;;  %v1113_v48 = vmov 0.0   ;;  %s1273_s1 = inlined_call_operand.vmem [shape: bf16[128,128], index: 1, kind: input, shape index: {}]   ;;  %s1274_s0 = inlined_call_operand.vmem [shape: bf16[128,128], index: 0, kind: input, shape index: {}]   ;;  %s1275_s2 = inlined_call_operand.vmem [shape: f32[128,1], index: 2, kind: input, shape index: {}]   ;;  %s1276_s4 = inlined_call_operand.vmem [shape: s32[128,1], index: 4, kind: input, shape index: {}]   ;;  %s1277_s3 = inlined_call_operand.vmem [shape: f32[1,128], index: 3, kind: input, shape index: {}]   ;;  %s1278_s5 = inlined_call_operand.vmem [shape: s32[1,128], index: 5, kind: input, shape index: {}]   ;;  %s1279_s6 = inlined_call_operand.vmem [shape: f32[128,1], index: 6, kind: output, shape index: {}]  }
   0x1   :  { %v1092_v0 = vld [vmem:[%s1273_s1 + $0x38] sm:$0xff]   ;;  %1091 = vset.pattern.permute.xlu0 %v1112_v1  ;;  %v1093_v2 = vld [vmem:[%s1273_s1 + $0x30] sm:$0xff]   ;;  %v1094_v3 = vld [vmem:[%s1273_s1 + $0x28] sm:$0xff]   ;;  %988 = vst.msk [vmem:[%s1279_s6 + $0x8] sm:$0xff] %vm986_vm2, %v1113_v48 }
   0x2   :  { %1041 = vmatprep.subr.bf16.mxu0 %v1092_v0  ;;  %1073 = vmatprep.subr.bf16.mxu1 %v1092_v0  ;;  %v1100_v4 = vld [vmem:[%s1274_s0] sm:$0xff]   ;;  %v1096_v9 = vld [vmem:[%s1273_s1 + $0x18] sm:$0xff]   ;;  %v1097_v10 = vld [vmem:[%s1273_s1 + $0x10] sm:$0xff]   ;;  %v402_v23 = vshrl.u32 %v401_v19, 7  ;;  %v436_v24 = vand.u32 127, %v401_v19  ;;  %989 = vst.msk [vmem:[%s1279_s6 + $0x10] sm:$0xff] %vm986_vm2, %v1113_v48 }
   0x3   :  { %1042 = vmatpush3.bf16.xpose.msra.mxu0 %v1092_v0  ;;  %1081 = vmatpush3.bf16.xpose.msra.mxu1 %v1092_v0  ;;  %v249_v5 = vld [vmem:[%s1275_s2] sm:$0xff]  ;;  %v1098_v11 = vld [vmem:[%s1273_s1 + $0x8] sm:$0xff]   ;;  %v1104_v15 = vld [vmem:[%s1274_s0 + $0x10] sm:$0xff]   ;;  %990 = vst.msk [vmem:[%s1279_s6 + $0x18] sm:$0xff] %vm986_vm2, %v1113_v48 }
   0x4   :  { %1043 = vmatprep.subr.bf16.mxu0 %v1093_v2  ;;  %1074 = vmatprep.subr.bf16.mxu1 %v1093_v2  ;;  %v1102_v6 = vld [vmem:[%s1274_s0 + $0x20] sm:$0xff]   ;;  %v1101_v13 = vld [vmem:[%s1274_s0 + $0x8] sm:$0xff]   ;;  %v1105_v16 = vld [vmem:[%s1274_s0 + $0x30] sm:$0xff]   ;;  %vm437_vm0 = vcmp.eq.s32.totalorder %v402_v23, %v436_v24  ;;  %991 = vst.msk [vmem:[%s1279_s6 + $0x20] sm:$0xff] %vm986_vm2, %v1113_v48 }
   0x5   :  { %1057 = vmatprep.mubr.bf16.mxu0 %v1100_v4  ;;  %268 = vperm.xlu0 %1091, %v249_v5   ;;  %v469_v7 = vld [vmem:[%s1276_s4] sm:$0xff]  ;;  %v1103_v14 = vld [vmem:[%s1274_s0 + $0x28] sm:$0xff]   ;;  %v1106_v17 = vld [vmem:[%s1274_s0 + $0x18] sm:$0xff]   ;;  %992 = vst.msk [vmem:[%s1279_s6 + $0x28] sm:$0xff] %vm986_vm2, %v1113_v48 }
   0x6   :  { %1065 = vmatprep.mubr.bf16.mxu1 %v1102_v6  ;;  %v1095_v8 = vld [vmem:[%s1273_s1 + $0x20] sm:$0xff]   ;;  %v1107_v18 = vld [vmem:[%s1274_s0 + $0x38] sm:$0xff]   ;;  %993 = vst.msk [vmem:[%s1279_s6 + $0x30] sm:$0xff] %vm986_vm2, %v1113_v48  ;;  %994 = vst.msk [vmem:[%s1279_s6 + $0x38] sm:$0xff] %vm986_vm2, %v1113_v48 }
   0x7   :  { %v1099_v12 = vld [vmem:[%s1273_s1] sm:$0xff]   ;;  %995 = vst.msk [vmem:[%s1279_s6 + $0x40] sm:$0xff] %vm986_vm2, %v1113_v48  ;;  %996 = vst.msk [vmem:[%s1279_s6 + $0x48] sm:$0xff] %vm986_vm2, %v1113_v48 }
   0x8   :  { %v1023_v20 = vld [vmem:[%s1277_s3] ss:$0 sm:$0xff]  ;;  %997 = vst.msk [vmem:[%s1279_s6 + $0x50] sm:$0xff] %vm986_vm2, %v1113_v48  ;;  %998 = vst.msk [vmem:[%s1279_s6 + $0x58] sm:$0xff] %vm986_vm2, %v1113_v48 }
   0x9   :  { %487 = vperm.xlu0 %1091, %v469_v7   ;;  %v1024_v30 = vld [vmem:[%s1278_s5] ss:$0 sm:$0xff]  ;;  %999 = vst.msk [vmem:[%s1279_s6 + $0x60] sm:$0xff] %vm986_vm2, %v1113_v48  ;;  %1000 = vst.msk [vmem:[%s1279_s6 + $0x68] sm:$0xff] %vm986_vm2, %v1113_v48 }
   0xa   :  { %1001 = vst.msk [vmem:[%s1279_s6 + $0x70] sm:$0xff] %vm986_vm2, %v1113_v48  ;;  %1002 = vst.msk [vmem:[%s1279_s6 + $0x78] sm:$0xff] %vm986_vm2, %v1113_v48 }
   0xb   :  { %1044 = vmatpush3.bf16.xpose.msra.mxu0 %v1093_v2  ;;  %1082 = vmatpush3.bf16.xpose.msra.mxu1 %v1093_v2 }
   0xc   :  { %1045 = vmatprep.subr.bf16.mxu0 %v1094_v3  ;;  %1075 = vmatprep.subr.bf16.mxu1 %v1094_v3 }
  0x13   :  { %1046 = vmatpush3.bf16.xpose.msra.mxu0 %v1094_v3  ;;  %1083 = vmatpush3.bf16.xpose.msra.mxu1 %v1094_v3 }
  0x14   :  { %1047 = vmatprep.subr.bf16.mxu0 %v1095_v8  ;;  %1076 = vmatprep.subr.bf16.mxu1 %v1095_v8 }
  0x1b   :  { %1048 = vmatpush3.bf16.xpose.msra.mxu0 %v1095_v8  ;;  %1084 = vmatpush3.bf16.xpose.msra.mxu1 %v1095_v8 }
  0x1c   :  { %1049 = vmatprep.subr.bf16.mxu0 %v1096_v9  ;;  %1077 = vmatprep.subr.bf16.mxu1 %v1096_v9 }
  0x23   :  { %1050 = vmatpush3.bf16.xpose.msra.mxu0 %v1096_v9  ;;  %1085 = vmatpush3.bf16.xpose.msra.mxu1 %v1096_v9 }
  0x24   :  { %1051 = vmatprep.subr.bf16.mxu0 %v1097_v10  ;;  %1078 = vmatprep.subr.bf16.mxu1 %v1097_v10 }
  0x2b   :  { %1052 = vmatpush3.bf16.xpose.msra.mxu0 %v1097_v10  ;;  %1086 = vmatpush3.bf16.xpose.msra.mxu1 %v1097_v10 }
  0x2c   :  { %1053 = vmatprep.subr.bf16.mxu0 %v1098_v11  ;;  %1079 = vmatprep.subr.bf16.mxu1 %v1098_v11 }
  0x33   :  { %1054 = vmatpush3.bf16.xpose.msra.mxu0 %v1098_v11  ;;  %1087 = vmatpush3.bf16.xpose.msra.mxu1 %v1098_v11 }
  0x34   :  { %1055 = vmatprep.subr.bf16.mxu0 %v1099_v12  ;;  %1080 = vmatprep.subr.bf16.mxu1 %v1099_v12 }
  0x3b   :  { %1056 = vmatpush3.bf16.xpose.msra.mxu0 %v1099_v12  ;;  %1088 = vmatpush3.bf16.xpose.msra.mxu1 %v1099_v12 }
  0x42   :  { %1058 = vmatmul.mubr.bf16.vlgmr.msra.gmra.mxu0 %v1101_v13  ;;  %1066 = vmatmul.mubr.bf16.vlgmr.msra.gmra.mxu1 %v1103_v14 }
  0x43   :  { %1061 = vmatprep.mubr.bf16.mxu0 %v1104_v15  ;;  %1069 = vmatprep.mubr.bf16.mxu1 %v1105_v16 }
  0x4a   :  { %1062 = vmatmul.mubr.bf16.gmra.mxu0 %v1106_v17  ;;  %1070 = vmatmul.mubr.bf16.gmra.mxu1 %v1107_v18 }
  0x80   :  { %v269_v21 = vpop.permute.xlu0 %268 }
  0x81   :  { %v352_v25 = vadd.f32 %v1023_v20, %v269_v21 }
  0x84   :  { %v488_v31 = vpop.permute.xlu0 %487 }
  0x85   :  { %vm538_vm1 = vcmp.eq.s32.totalorder %v488_v31, %v1024_v30 }
 0x102   :  { %v1059_v22 = vpop.f32.mrf.mxu0  ;;  %v1067_v26 = vpop.f32.mrf.mxu1 }
 0x104   :  { %v186_v27 = vpop.f32.mrf.mxu0  ;;  %v218_v29 = vpop.f32.mrf.mxu1 }
 0x105   :  { %v368_v28 = vmul.f32 2.0, %v186_v27 }
 0x106   :  { %v1060_v32 = vpop.f32.mrf.mxu0  ;;  %v1068_v34 = vpop.f32.mrf.mxu1 }
 0x107   :  { %v384_v33 = vsub.f32 %v352_v25, %v368_v28 }
 0x108   :  { %v189_v35 = vpop.f32.mrf.mxu0  ;;  %v221_v37 = vpop.f32.mrf.mxu1 }
 0x109   :  { %v453_v36 = vsel %vm437_vm0, 0.0, %v384_v33 }
 0x10a   :  { %v554_v38 = vsel %vm538_vm1, %v453_v36, -1e+30  ;;  %v1063_v39 = vpop.f32.mrf.mxu0  ;;  %v1071_v40 = vpop.f32.mrf.mxu1  ;;  %v602_v43 = vsel %vm538_vm1, 1e+30, %v453_v36 }
 0x10b   :  { %570 = vmax.xlane.f32.xlu1 %v554_v38 }
 0x10c   :  { %v202_v41 = vpop.f32.mrf.mxu0  ;;  %v234_v42 = vpop.f32.mrf.mxu1 }
 0x10e   :  { %v1064_v44 = vpop.f32.mrf.mxu0  ;;  %v1072_v45 = vpop.f32.mrf.mxu1 }
 0x10f   :  { %618 = vmin.xlane.f32.xlu1 %v602_v43 }
 0x110   :  { %v205_v46 = vpop.f32.mrf.mxu0  ;;  %v237_v47 = vpop.f32.mrf.mxu1 }
 0x194   :  { %v571_v49 = vpop.xlane.xlu1 %570 }
 0x195   :  { %v650_v50 = vmax.f32 %v571_v49, 1e-12 }
 0x197   :  { %1108 = vrsqrt.f32 %v650_v50  ;;  %vm668_vm3 = vcmp.eq.f32.partialorder %v650_v50, inf  ;;  %v671_v58 = vand.u32 2147483648, %v650_v50  ;;  %vm670_vm5 = vcmp.eq.f32.partialorder %v650_v50, 0.0 }
 0x198   :  { %v619_v51 = vpop.xlane.xlu1 %618 }
 0x199   :  { %v778_v52 = vmax.f32 %v619_v51, 1e-12 }
 0x19b   :  { %1110 = vrsqrt.f32 %v778_v52  ;;  %vm796_vm4 = vcmp.eq.f32.partialorder %v778_v52, inf  ;;  %v799_v59 = vand.u32 2147483648, %v778_v52  ;;  %vm798_vm6 = vcmp.eq.f32.partialorder %v778_v52, 0.0 }
 0x1a4   :  { %v1109_v53 = vpop.eup %1108 }
 0x1a5   :  { %v667_v54 = vmul.f32 %v1109_v53, %v650_v50 }
 0x1a7   :  { %v669_v56 = vsel %vm668_vm3, %v650_v50, %v667_v54 }
 0x1a8   :  { %v1111_v55 = vpop.eup %1110  ;;  %v672_v61 = vsel %vm670_vm5, %v671_v58, %v669_v56 }
 0x1a9   :  { %v795_v57 = vmul.f32 %v1111_v55, %v778_v52 }
 0x1ab   :  { %v797_v60 = vsel %vm796_vm4, %v778_v52, %v795_v57 }
 0x1ac   :  { %v800_v62 = vsel %vm798_vm6, %v799_v59, %v797_v60 }
 0x1ad   :  { %v906_v63 = vsub.f32 %v672_v61, %v800_v62 }
 0x1af   :  { %v922_v0 = vadd.f32 0.3, %v906_v63 }
 0x1b1   :  { %v938_v1 = vmax.f32 %v922_v0, 0.0 }
 0x1b3   :  { %987 = vst.msk [vmem:[%s1279_s6] sm:$0xff] %vm986_vm2, %v938_v1 }

</bundles_post_ra>
